<compile_context>
chip_gen: v6e
topology: v6e:2x2x1
jax: 0.10.0
libtpu: 0.0.40
codegen_flags: <defaults>
</compile_context>

<pallas_src>
from functools import partial

import jax
import jax.numpy as jnp
from jax.experimental import pallas as pl
from jax.experimental.pallas import tpu as pltpu


def _round_up(x, m):
    return (x + m - 1) // m * m


# ----------------------------------------------------------------------------
# Kernels
# ----------------------------------------------------------------------------

def _matmul_bias_kernel(p_ref, w_ref, b_ref, o_ref):
    """Regime A: single reduction step, VMEM-resident weight, direct write.

    p_ref: (tm, CKKp) bf16   w_ref: (CKKp, OCp) bf16
    b_ref: (1, OCp)  f32     o_ref: (tm, OCp)   out dtype
    """
    o_ref[...] = (jnp.dot(p_ref[...], w_ref[...],
                          preferred_element_type=jnp.float32)
                  + b_ref[...]).astype(o_ref.dtype)


def _matmul_bias_acc_kernel(p_ref, w_ref, b_ref, o_ref, acc_ref):
    """Regime B: tiled OC + CKK reduction with f32 VMEM accumulator.

    p_ref: (tm, tk) bf16   w_ref: (tk, tn) bf16   b_ref: (1, tn) f32
    o_ref: (tm, tn)        acc_ref: (tm, tn) f32
    """
    kk = pl.program_id(2)

    @pl.when(kk == 0)
    def _():
        acc_ref[...] = jnp.zeros_like(acc_ref)

    acc_ref[...] += jnp.dot(p_ref[...], w_ref[...],
                            preferred_element_type=jnp.float32)

    @pl.when(kk == pl.num_programs(2) - 1)
    def _():
        o_ref[...] = (acc_ref[...] + b_ref[...]).astype(o_ref.dtype)


# ----------------------------------------------------------------------------
# Planning (tile sizes, VMEM budget)
# ----------------------------------------------------------------------------

def _vmem_budget():
    try:
        cap = int(pltpu.get_tpu_info().vmem_capacity_bytes)
    except Exception:
        cap = 64 * 1024 * 1024          # conservative default (v7x per-TC VMEM)
    limit = int(cap * 0.64)             # ≈41 MiB on v7x, ≈82 MiB on v5e/v6e
    budget = int(limit * 0.75)          # headroom for compiler-internal scratch
    return budget, limit


def _plan(M, CKK, OC, out_bytes):
    budget, limit = _vmem_budget()
    OCp = _round_up(OC, 128)
    CKKp = _round_up(CKK, 128)

    row_cap = max(_round_up(M, 128), 128)
    tm_cands = [c for c in (1024, 512, 256, 128) if c <= row_cap] or [128]

    # ---- Regime A: whole CKK in one step, weight resident in VMEM -----------
    w_bytes = 2 * CKKp * OCp * 2        # conservatively count double-buffered
    if w_bytes <= budget // 2:
        for tm in tm_cands:
            need = (2 * tm * CKKp * 2          # patches, bf16, double-buffered
                    + w_bytes                  # weight (constant index_map)
                    + 2 * OCp * 4              # bias
                    + 2 * tm * OCp * out_bytes)  # output, double-buffered
            if need > budget:
                continue
            Mp = _round_up(M, tm)
            if tm > 128 and Mp // tm < 2 and M > 256:
                # keep >=2 parallel row tiles so v7x's two TCs both get work
                continue
            return dict(regime="A", tm=tm, Mp=Mp, CKKp=CKKp, OCp=OCp,
                        tk=CKKp, tn=OCp, vmem_limit=limit)

    # ---- Regime B: tile OC and the CKK reduction -----------------------------
    tn = 256 if OCp >= 256 else OCp
    OCp_b = _round_up(OCp, tn)
    tk = 128
    for cand in (512, 384, 256, 128):   # pad CKK up instead of shrinking tk
        if _round_up(CKK, cand) - CKKp <= 128:
            tk = cand
            break
    CKKp_b = _round_up(CKK, tk)
    tm = 128
    for cand in tm_cands:
        need = (2 * cand * tk * 2 + 2 * tk * tn * 2 + 2 * tn * 4
                + 2 * cand * tn * out_bytes + cand * tn * 4)
        if need <= budget:
            tm = cand
            break
    Mp = _round_up(M, tm)
    return dict(regime="B", tm=tm, Mp=Mp, CKKp=CKKp_b, OCp=OCp_b,
                tk=tk, tn=tn, vmem_limit=limit)


# ----------------------------------------------------------------------------
# im2col (channel-last, pre-padded) and the pallas_call driver
# ----------------------------------------------------------------------------

def _im2col_nhwc(x_nhwc, k, stride, padding, Mp, CKKp):
    """x_nhwc: (N, H, W, C) -> padded patches (Mp, CKKp), feature order (ki,kj,c)."""
    N, H, W, C = x_nhwc.shape
    xp = jnp.pad(x_nhwc, ((0, 0), (padding, padding), (padding, padding), (0, 0)))
    OH = (H + 2 * padding - k) // stride + 1
    OW = (W + 2 * padding - k) // stride + 1
    cols = [xp[:, ki:ki + stride * OH:stride, kj:kj + stride * OW:stride, :]
            for ki in range(k) for kj in range(k)]
    patches = jnp.concatenate(cols, axis=-1).reshape(N * OH * OW, k * k * C)
    M, CKK = patches.shape
    if Mp != M or CKKp != CKK:
        # zero-pad rows (discarded later) and features (matched by zero weight rows)
        patches = jnp.pad(patches, ((0, Mp - M), (0, CKKp - CKK)))
    return patches


def _conv_matmul(patches, w_t, b, out_dtype, plan, M, OC):
    Mp, CKKp = patches.shape
    OCp = w_t.shape[1]
    tm, tk, tn = plan["tm"], plan["tk"], plan["tn"]
    out_bytes = jnp.dtype(out_dtype).itemsize

    cost = pl.CostEstimate(
        flops=2 * Mp * CKKp * OCp,
        transcendentals=0,
        bytes_accessed=int(Mp * CKKp * 2 + CKKp * OCp * 2 + OCp * 4
                           + Mp * OCp * out_bytes),
    )

    if plan["regime"] == "A":
        out_p = pl.pallas_call(
            _matmul_bias_kernel,
            out_shape=jax.ShapeDtypeStruct((Mp, OCp), out_dtype),
            grid_spec=pltpu.PrefetchScalarGridSpec(
                num_scalar_prefetch=0,
                grid=(Mp // tm,),
                in_specs=[
                    pl.BlockSpec((tm, CKKp), lambda i: (i, 0)),
                    pl.BlockSpec((CKKp, OCp), lambda i: (0, 0)),  # resident weight
                    pl.BlockSpec((1, OCp), lambda i: (0, 0)),     # resident bias
                ],
                out_specs=pl.BlockSpec((tm, OCp), lambda i: (i, 0)),
            ),
            compiler_params=pltpu.CompilerParams(
                dimension_semantics=("parallel",),
                vmem_limit_bytes=plan["vmem_limit"],
            ),
            cost_estimate=cost,
        )(patches, w_t, b)
    else:
        out_p = pl.pallas_call(
            _matmul_bias_acc_kernel,
            out_shape=jax.ShapeDtypeStruct((Mp, OCp), out_dtype),
            grid_spec=pltpu.PrefetchScalarGridSpec(
                num_scalar_prefetch=0,
                grid=(Mp // tm, OCp // tn, CKKp // tk),
                in_specs=[
                    pl.BlockSpec((tm, tk), lambda i, j, kk: (i, kk)),
                    pl.BlockSpec((tk, tn), lambda i, j, kk: (kk, j)),
                    pl.BlockSpec((1, tn), lambda i, j, kk: (0, j)),
                ],
                out_specs=pl.BlockSpec((tm, tn), lambda i, j, kk: (i, j)),
                scratch_shapes=[pltpu.VMEM((tm, tn), jnp.float32)],
            ),
            compiler_params=pltpu.CompilerParams(
                dimension_semantics=("parallel", "parallel", "arbitrary"),
                vmem_limit_bytes=plan["vmem_limit"],
            ),
            cost_estimate=cost,
        )(patches, w_t, b)

    return out_p[:M, :OC]   # drop padded rows/cols


@partial(jax.jit, static_argnames=("stride", "padding"))
def _equal_conv2d_fwd(x, weight, bias, *, stride, padding):
    """x: (N, C, H, W), weight: (OC, C, K, K), bias: (OC,) -> (N, OC, OH, OW)."""
    N, C, H, W = x.shape
    OC, _, k, _ = weight.shape
    OH = (H + 2 * padding - k) // stride + 1
    OW = (W + 2 * padding - k) // stride + 1
    M, CKK = N * OH * OW, k * k * C
    out_dtype = x.dtype

    plan = _plan(M, CKK, OC, jnp.dtype(out_dtype).itemsize)

    # NHWC once (cheap vs. transposing the K^2x larger patches array), bf16 MXU inputs.
    x_nhwc = jnp.transpose(x, (0, 2, 3, 1)).astype(jnp.bfloat16)
    patches = _im2col_nhwc(x_nhwc, k, stride, padding, plan["Mp"], plan["CKKp"])

    # (OC, C, K, K) -> (K, K, C, OC) -> (CKK, OC); row order (ki, kj, c) matches patches.
    w_t = jnp.transpose(weight, (2, 3, 1, 0)).reshape(CKK, OC)
    w_t = jnp.pad(w_t, ((0, plan["CKKp"] - CKK),
                        (0, plan["OCp"] - OC))).astype(jnp.bfloat16)
    b = jnp.pad(bias.astype(jnp.float32).reshape(1, OC),
                ((0, 0), (0, plan["OCp"] - OC)))

    out_flat = _conv_matmul(patches, w_t, b, out_dtype, plan, M, OC)  # (M, OC)
    # NCHW output contract of the PyTorch module (see TODO at top of file).
    return out_flat.reshape(N, OH, OW, OC).transpose(0, 3, 1, 2)


# ----------------------------------------------------------------------------
# Module wrapper matching the PyTorch EqualConv2d forward
# ----------------------------------------------------------------------------

class EqualConv2d:
    """JAX/Pallas re-implementation of the PyTorch EqualConv2d forward."""

    def __init__(self, in_channel, out_channel, kernel_size, stride=1, padding=0,
                 bias=True, key=None):
        if key is None:
            key = jax.random.PRNGKey(0)
        # torch.randn equivalent (deterministic synthetic init)
        self.weight = jax.random.normal(
            key, (out_channel, in_channel, kernel_size, kernel_size),
            dtype=jnp.float32)
        self.bias = jnp.zeros((out_channel,), dtype=jnp.float32) if bias else None
        self.stride = stride
        self.padding = padding
        self.kernel_size = kernel_size
        self.first_k_oup = None   # dynamic-channel slicing knob (PyTorch attr)

    def __call__(self, x):
        in_channel = x.shape[1]
        weight = self.weight
        bbias = self.bias
        if getattr(self, "first_k_oup", None) is not None:
            weight = weight[: self.first_k_oup]
            if bbias is not None:
                bbias = bbias[: self.first_k_oup]
        weight = weight[:, :in_channel]      # dynamic input-channel slicing
        # NOTE: reference forward uses the raw (unscaled) weight with F.conv2d,
        # so no EqualLR 1/sqrt(fan_in) factor is applied here either.
        if bbias is None:
            bbias = jnp.zeros((weight.shape[0],), dtype=jnp.float32)
        return _equal_conv2d_fwd(x, weight, bbias,
                                 stride=self.stride, padding=self.padding)


if __name__ == "__main__":
    key = jax.random.PRNGKey(0)
    k_x, k_w = jax.random.split(key)

    N, IC, H, W = 2, 4, 16, 16
    OC, K, stride, padding = 8, 3, 1, 1

    x = jax.random.normal(k_x, (N, IC, H, W), dtype=jnp.float32)

    conv = EqualConv2d(IC, OC, K, stride=stride, padding=padding, bias=True, key=k_w)
    out = jax.block_until_ready(conv(x))

    # Reference check: quantize inputs to bf16 (same as the kernel's MXU inputs)
    # and run XLA's conv with f32 accumulation -> apples-to-apples comparison.
    x_q = x.astype(jnp.bfloat16).astype(jnp.float32)
    w_q = conv.weight.astype(jnp.bfloat16).astype(jnp.float32)
    ref = jax.lax.conv_general_dilated(
        x_q, w_q, window_strides=(stride, stride),
        padding=[(padding, padding), (padding, padding)],
        dimension_numbers=("NCHW", "OIHW", "NCHW"),
        precision=jax.lax.Precision.HIGHEST,
    ) + conv.bias.reshape(1, OC, 1, 1)

    assert out.shape == (N, OC, H, W), out.shape
    max_err = float(jnp.max(jnp.abs(out - ref)))
    assert jnp.allclose(out, ref, atol=2e-3, rtol=2e-3), max_err

    print("KERNEL_OK")
</pallas_src>

<mosaic_0001>
module attributes {stable_mosaic.version = 11 : i64} {
  func.func @_matmul_bias_kernel(%arg0: i32, %arg1: memref<256x128xbf16, #tpu.memory_space<vmem>>, %arg2: memref<128x128xbf16, #tpu.memory_space<vmem>>, %arg3: memref<1x128xf32, #tpu.memory_space<vmem>>, %arg4: memref<256x128xf32, #tpu.memory_space<vmem>>) attributes {dimension_semantics = [#tpu.dimension_semantics<parallel>], iteration_bounds = array<i64: 2>, scalar_prefetch = 0 : i64, scratch_operands = 0 : i64, tpu.core_type = #tpu.core_type<tc>, window_params = [{transform_indices = @transform_0, window_bounds = array<i64: 256, 128>}, {pipeline_mode = #tpu.pipeline_mode<synchronous>, transform_indices = @transform_1, window_bounds = array<i64: 128, 128>}, {pipeline_mode = #tpu.pipeline_mode<synchronous>, transform_indices = @transform_2, window_bounds = array<i64: 1, 128>}, {transform_indices = @transform_3, window_bounds = array<i64: 256, 128>}]} {
    %c0 = arith.constant 0 : index
    %c0_0 = arith.constant 0 : index
    %0 = vector.load %arg1[%c0, %c0_0] : memref<256x128xbf16, #tpu.memory_space<vmem>>, vector<256x128xbf16>
    %c0_1 = arith.constant 0 : index
    %c0_2 = arith.constant 0 : index
    %1 = vector.load %arg2[%c0_1, %c0_2] : memref<128x128xbf16, #tpu.memory_space<vmem>>, vector<128x128xbf16>
    %cst = arith.constant dense<0.000000e+00> : vector<256x128xf32>
    %2 = tpu.matmul %0, %1, %cst {dimension_numbers = #tpu.dot_dimension_numbers<[1], [0], [0], [1], [0, 0, 1, 1], [], []>} : vector<256x128xbf16>, vector<128x128xbf16>, vector<256x128xf32> -> vector<256x128xf32>
    %c0_3 = arith.constant 0 : index
    %c0_4 = arith.constant 0 : index
    %3 = vector.load %arg3[%c0_3, %c0_4] : memref<1x128xf32, #tpu.memory_space<vmem>>, vector<1x128xf32>
    %4 = vector.broadcast %3 : vector<1x128xf32> to vector<256x128xf32>
    %5 = arith.addf %2, %4 : vector<256x128xf32>
    %c0_5 = arith.constant 0 : index
    %c0_6 = arith.constant 0 : index
    %6 = vector.load %arg4[%c0_5, %c0_6] : memref<256x128xf32, #tpu.memory_space<vmem>>, vector<256x128xf32>
    tpu.vector_store %arg4[%c0_5, %c0_6], %5 {strides = array<i32>} : memref<256x128xf32, #tpu.memory_space<vmem>>, vector<256x128xf32>,
    return
  }
  func.func @transform_0(%arg0: i32) -> (i32, i32) {
    %c0_i32 = arith.constant 0 : i32
    %c0_i32_0 = arith.constant 0 : i32
    return %arg0, %c0_i32 : i32, i32
  }
  func.func @transform_1(%arg0: i32) -> (i32, i32) {
    %c0_i32 = arith.constant 0 : i32
    %c0_i32_0 = arith.constant 0 : i32
    %c0_i32_1 = arith.constant 0 : i32
    return %c0_i32, %c0_i32_0 : i32, i32
  }
  func.func @transform_2(%arg0: i32) -> (i32, i32) {
    %c0_i32 = arith.constant 0 : i32
    %c0_i32_0 = arith.constant 0 : i32
    %c0_i32_1 = arith.constant 0 : i32
    return %c0_i32, %c0_i32_0 : i32, i32
  }
  func.func @transform_3(%arg0: i32) -> (i32, i32) {
    %c0_i32 = arith.constant 0 : i32
    %c0_i32_0 = arith.constant 0 : i32
    return %arg0, %c0_i32 : i32, i32
  }
}

</mosaic_0001>

<bundles_post_ra>
// kernel: _equal_conv2d_fwd.1
= control target key start
LH: loop header
LB: loop body
LE: loop exit
PB: predicated region body
PF: predicated region fallthrough
CT: control target
= control target key end

     0   :  { %s807_s12 = smov 0   ;;  %s941_s0 = inlined_call_operand.vmem [shape: bf16[512,128], index: 0, kind: input, shape index: {}]   ;;  %s942_s1 = inlined_call_operand.vmem [shape: bf16[128,128], index: 1, kind: input, shape index: {}]   ;;  %s943_s2 = inlined_call_operand.vmem [shape: f32[1,128], index: 2, kind: input, shape index: {}]   ;;  %s944_s3 = inlined_call_operand.vmem [shape: f32[512,128], index: 3, kind: output, shape index: {}]  }
   0x1 LB: > { %s623_s13 = sadd.s32 4294967295, %s785_s12   ;;  %p627_p0 = scmp.ge.s32.totalorder %s785_s12, 1  ;;  %s785_s12 = sphi %s807_s12, %s13_s12  }
   0x2   : > { %p138_p1 = scmp.lt.s32.totalorder %s785_s12, 3 }
   0x4   : > { %p139_p2 = pnand %p627_p0, %p138_p1 }
   0x5   : > { %s628_s16 = sshll.u32 (!%p139_p2), %s623_s13, 5 }
   0x6   : > { %142 = sbr.rel (%p139_p2) target bundleno = 270 (0x10e), region = 32  ;;  %p163_p3 = scmp.lt.s32.totalorder (!%p139_p2), %s628_s16, 63 }
   0xb   : > { %v755_v0 = vld [vmem:[%s942_s1 + $0x38] sm:$0xff]   ;;  %v756_v1 = vld [vmem:[%s942_s1 + $0x30] sm:$0xff]   ;;  %s946_s16 = smov (!%p163_p3, %s628_s16), 63  ;;  %v757_v2 = vld [vmem:[%s942_s1 + $0x28] sm:$0xff]  }
   0xc   : > { %683 = vmatprep.subr.bf16.mxu0 %v755_v0  ;;  %731 = vmatprep.subr.bf16.mxu1 %v755_v0  ;;  %s629_s21 = sshll.u32 %s946_s16, 2  ;;  %v758_v3 = vld [vmem:[%s942_s1 + $0x20] sm:$0xff]   ;;  %v759_v6 = vld [vmem:[%s942_s1 + $0x18] sm:$0xff]   ;;  %v760_v7 = vld [vmem:[%s942_s1 + $0x10] sm:$0xff]   ;;  %s631_s8 = sshll.u32 %s946_s16, 3 }
   0xd   : > { %684 = vmatpush3.bf16.msra.mxu0 %v755_v0  ;;  %739 = vmatpush3.bf16.msra.mxu1 %v755_v0  ;;  %s830_s24 = scalar_lea.vmem %s941_s0, %s629_s21  ;;  %v761_v8 = vld [vmem:[%s942_s1 + $0x8] sm:$0xff]   ;;  %v762_v9 = vld [vmem:[%s942_s1] sm:$0xff]   ;;  %s872_s14 = scalar_lea.vmem %s944_s3, %s631_s8 }
   0xe   : > { %685 = vmatprep.subr.bf16.mxu0 %v756_v1  ;;  %732 = vmatprep.subr.bf16.mxu1 %v756_v1  ;;  %v763_v4 = vld [vmem:[%s830_s24] sm:$0xff]   ;;  %v765_v10 = vld [vmem:[%s830_s24 + $0x8] sm:$0xff]   ;;  %v767_v12 = vld [vmem:[%s830_s24 + $0x10] sm:$0xff]  }
   0xf   : > { %v764_v5 = vld [vmem:[%s830_s24 + $0x40] sm:$0xff]   ;;  %699 = vmatprep.mubr.bf16.mxu0 %v763_v4  ;;  %v766_v11 = vld [vmem:[%s830_s24 + $0x48] sm:$0xff]   ;;  %v768_v13 = vld [vmem:[%s830_s24 + $0x50] sm:$0xff]  }
  0x10   : > { %715 = vmatprep.mubr.bf16.mxu1 %v764_v5  ;;  %v769_v14 = vld [vmem:[%s830_s24 + $0x18] sm:$0xff]   ;;  %v771_v16 = vld [vmem:[%s830_s24 + $0x20] sm:$0xff]   ;;  %v773_v18 = vld [vmem:[%s830_s24 + $0x28] sm:$0xff]  }
  0x11   : > { %686 = vmatpush3.bf16.msra.mxu0 %v756_v1  ;;  %740 = vmatpush3.bf16.msra.mxu1 %v756_v1  ;;  %v770_v15 = vld [vmem:[%s830_s24 + $0x58] sm:$0xff]   ;;  %v772_v17 = vld [vmem:[%s830_s24 + $0x60] sm:$0xff]   ;;  %v774_v19 = vld [vmem:[%s830_s24 + $0x68] sm:$0xff]  }
  0x12   : > { %687 = vmatprep.subr.bf16.mxu0 %v757_v2  ;;  %733 = vmatprep.subr.bf16.mxu1 %v757_v2  ;;  %v775_v20 = vld [vmem:[%s830_s24 + $0x30] sm:$0xff]   ;;  %v777_v22 = vld [vmem:[%s830_s24 + $0x38] sm:$0xff]   ;;  %v867_v24 = vld [vmem:[%s943_s2] ss:$0 sm:$0xff] }
  0x13   : > { %v776_v21 = vld [vmem:[%s830_s24 + $0x70] sm:$0xff]   ;;  %v778_v23 = vld [vmem:[%s830_s24 + $0x78] sm:$0xff]  }
  0x15   : > { %688 = vmatpush3.bf16.msra.mxu0 %v757_v2  ;;  %741 = vmatpush3.bf16.msra.mxu1 %v757_v2 }
  0x16   : > { %689 = vmatprep.subr.bf16.mxu0 %v758_v3  ;;  %734 = vmatprep.subr.bf16.mxu1 %v758_v3 }
  0x19   : > { %690 = vmatpush3.bf16.msra.mxu0 %v758_v3  ;;  %742 = vmatpush3.bf16.msra.mxu1 %v758_v3 }
  0x1a   : > { %691 = vmatprep.subr.bf16.mxu0 %v759_v6  ;;  %735 = vmatprep.subr.bf16.mxu1 %v759_v6 }
  0x1d   : > { %692 = vmatpush3.bf16.msra.mxu0 %v759_v6  ;;  %743 = vmatpush3.bf16.msra.mxu1 %v759_v6 }
  0x1e   : > { %693 = vmatprep.subr.bf16.mxu0 %v760_v7  ;;  %736 = vmatprep.subr.bf16.mxu1 %v760_v7 }
  0x21   : > { %694 = vmatpush3.bf16.msra.mxu0 %v760_v7  ;;  %744 = vmatpush3.bf16.msra.mxu1 %v760_v7 }
  0x22   : > { %695 = vmatprep.subr.bf16.mxu0 %v761_v8  ;;  %737 = vmatprep.subr.bf16.mxu1 %v761_v8 }
  0x25   : > { %696 = vmatpush3.bf16.msra.mxu0 %v761_v8  ;;  %745 = vmatpush3.bf16.msra.mxu1 %v761_v8 }
  0x26   : > { %697 = vmatprep.subr.bf16.mxu0 %v762_v9  ;;  %738 = vmatprep.subr.bf16.mxu1 %v762_v9 }
  0x29   : > { %698 = vmatpush3.bf16.msra.mxu0 %v762_v9  ;;  %746 = vmatpush3.bf16.msra.mxu1 %v762_v9 }
  0x2c   : > { %700 = vmatmul.mubr.bf16.vlgmr.msra.gmra.mxu0 %v765_v10  ;;  %716 = vmatmul.mubr.bf16.vlgmr.msra.gmra.mxu1 %v766_v11 }
  0x2d   : > { %703 = vmatprep.mubr.bf16.mxu0 %v767_v12  ;;  %719 = vmatprep.mubr.bf16.mxu1 %v768_v13 }
  0x34   : > { %704 = vmatmul.mubr.bf16.gmra.mxu0 %v769_v14  ;;  %720 = vmatmul.mubr.bf16.gmra.mxu1 %v770_v15 }
  0x35   : > { %707 = vmatprep.mubr.bf16.mxu0 %v771_v16  ;;  %723 = vmatprep.mubr.bf16.mxu1 %v772_v17 }
  0x3c   : > { %708 = vmatmul.mubr.bf16.gmra.mxu0 %v773_v18  ;;  %724 = vmatmul.mubr.bf16.gmra.mxu1 %v774_v19 }
  0x3d   : > { %711 = vmatprep.mubr.bf16.mxu0 %v775_v20  ;;  %727 = vmatprep.mubr.bf16.mxu1 %v776_v21 }
  0x44   : > { %712 = vmatmul.mubr.bf16.gmra.mxu0 %v777_v22  ;;  %728 = vmatmul.mubr.bf16.gmra.mxu1 %v778_v23 }
  0xec   : > { %v701_v25 = vpop.f32.mrf.mxu0  ;;  %v717_v26 = vpop.f32.mrf.mxu1 }
  0xed   : > { %v417_v27 = vadd.f32 %v701_v25, %v867_v24  ;;  %v481_v28 = vadd.f32 %v717_v26, %v867_v24 }
  0xee   : > { %v408_v29 = vpop.f32.mrf.mxu0  ;;  %v472_v30 = vpop.f32.mrf.mxu1 }
  0xef   : > { %537 = vst [vmem:[%s872_s14 + $0x10] sm:$0xff] %v417_v27  ;;  %553 = vst [vmem:[%s872_s14 + $0x90] sm:$0xff] %v481_v28  ;;  %v409_v31 = vadd.f32 %v867_v24, %v408_v29  ;;  %v473_v32 = vadd.f32 %v867_v24, %v472_v30 }
  0xf0   : > { %v702_v33 = vpop.f32.mrf.mxu0  ;;  %v718_v34 = vpop.f32.mrf.mxu1 }
  0xf1   : > { %535 = vst [vmem:[%s872_s14] sm:$0xff] %v409_v31  ;;  %551 = vst [vmem:[%s872_s14 + $0x80] sm:$0xff] %v473_v32  ;;  %v420_v35 = vadd.f32 %v702_v33, %v867_v24  ;;  %v484_v36 = vadd.f32 %v718_v34, %v867_v24 }
  0xf2   : > { %v411_v37 = vpop.f32.mrf.mxu0  ;;  %v475_v38 = vpop.f32.mrf.mxu1 }
  0xf3   : > { %538 = vst [vmem:[%s872_s14 + $0x18] sm:$0xff] %v420_v35  ;;  %554 = vst [vmem:[%s872_s14 + $0x98] sm:$0xff] %v484_v36  ;;  %v412_v39 = vadd.f32 %v867_v24, %v411_v37  ;;  %v476_v40 = vadd.f32 %v867_v24, %v475_v38 }
  0xf4   : > { %v705_v41 = vpop.f32.mrf.mxu0  ;;  %v721_v42 = vpop.f32.mrf.mxu1 }
  0xf5   : > { %536 = vst [vmem:[%s872_s14 + $0x8] sm:$0xff] %v412_v39  ;;  %552 = vst [vmem:[%s872_s14 + $0x88] sm:$0xff] %v476_v40  ;;  %v433_v43 = vadd.f32 %v705_v41, %v867_v24  ;;  %v497_v44 = vadd.f32 %v721_v42, %v867_v24 }
  0xf6   : > { %v424_v45 = vpop.f32.mrf.mxu0  ;;  %v488_v46 = vpop.f32.mrf.mxu1 }
  0xf7   : > { %541 = vst [vmem:[%s872_s14 + $0x30] sm:$0xff] %v433_v43  ;;  %557 = vst [vmem:[%s872_s14 + $0xb0] sm:$0xff] %v497_v44  ;;  %v425_v47 = vadd.f32 %v867_v24, %v424_v45  ;;  %v489_v48 = vadd.f32 %v867_v24, %v488_v46 }
  0xf8   : > { %v706_v49 = vpop.f32.mrf.mxu0  ;;  %v722_v50 = vpop.f32.mrf.mxu1 }
  0xf9   : > { %539 = vst [vmem:[%s872_s14 + $0x20] sm:$0xff] %v425_v47  ;;  %555 = vst [vmem:[%s872_s14 + $0xa0] sm:$0xff] %v489_v48  ;;  %v436_v51 = vadd.f32 %v706_v49, %v867_v24  ;;  %v500_v52 = vadd.f32 %v722_v50, %v867_v24 }
  0xfa   : > { %v427_v53 = vpop.f32.mrf.mxu0  ;;  %v491_v54 = vpop.f32.mrf.mxu1 }
  0xfb   : > { %542 = vst [vmem:[%s872_s14 + $0x38] sm:$0xff] %v436_v51  ;;  %558 = vst [vmem:[%s872_s14 + $0xb8] sm:$0xff] %v500_v52  ;;  %v428_v55 = vadd.f32 %v867_v24, %v427_v53  ;;  %v492_v56 = vadd.f32 %v867_v24, %v491_v54 }
  0xfc   : > { %v709_v57 = vpop.f32.mrf.mxu0  ;;  %v725_v58 = vpop.f32.mrf.mxu1 }
  0xfd   : > { %540 = vst [vmem:[%s872_s14 + $0x28] sm:$0xff] %v428_v55  ;;  %556 = vst [vmem:[%s872_s14 + $0xa8] sm:$0xff] %v492_v56  ;;  %v449_v59 = vadd.f32 %v709_v57, %v867_v24  ;;  %v513_v60 = vadd.f32 %v725_v58, %v867_v24 }
  0xfe   : > { %v440_v61 = vpop.f32.mrf.mxu0  ;;  %v504_v62 = vpop.f32.mrf.mxu1 }
  0xff   : > { %545 = vst [vmem:[%s872_s14 + $0x50] sm:$0xff] %v449_v59  ;;  %561 = vst [vmem:[%s872_s14 + $0xd0] sm:$0xff] %v513_v60  ;;  %v441_v63 = vadd.f32 %v867_v24, %v440_v61  ;;  %v505_v0 = vadd.f32 %v867_v24, %v504_v62 }
 0x100   : > { %v710_v1 = vpop.f32.mrf.mxu0  ;;  %v726_v2 = vpop.f32.mrf.mxu1 }
 0x101   : > { %543 = vst [vmem:[%s872_s14 + $0x40] sm:$0xff] %v441_v63  ;;  %559 = vst [vmem:[%s872_s14 + $0xc0] sm:$0xff] %v505_v0  ;;  %v452_v3 = vadd.f32 %v710_v1, %v867_v24  ;;  %v516_v4 = vadd.f32 %v726_v2, %v867_v24 }
 0x102   : > { %v443_v5 = vpop.f32.mrf.mxu0  ;;  %v507_v6 = vpop.f32.mrf.mxu1 }
 0x103   : > { %546 = vst [vmem:[%s872_s14 + $0x58] sm:$0xff] %v452_v3  ;;  %562 = vst [vmem:[%s872_s14 + $0xd8] sm:$0xff] %v516_v4  ;;  %v444_v7 = vadd.f32 %v867_v24, %v443_v5  ;;  %v508_v8 = vadd.f32 %v867_v24, %v507_v6 }
 0x104   : > { %v713_v9 = vpop.f32.mrf.mxu0  ;;  %v729_v10 = vpop.f32.mrf.mxu1 }
 0x105   : > { %544 = vst [vmem:[%s872_s14 + $0x48] sm:$0xff] %v444_v7  ;;  %560 = vst [vmem:[%s872_s14 + $0xc8] sm:$0xff] %v508_v8  ;;  %v465_v11 = vadd.f32 %v713_v9, %v867_v24  ;;  %v529_v12 = vadd.f32 %v729_v10, %v867_v24 }
 0x106   : > { %v456_v13 = vpop.f32.mrf.mxu0  ;;  %v520_v14 = vpop.f32.mrf.mxu1 }
 0x107   : > { %549 = vst [vmem:[%s872_s14 + $0x70] sm:$0xff] %v465_v11  ;;  %565 = vst [vmem:[%s872_s14 + $0xf0] sm:$0xff] %v529_v12  ;;  %v457_v15 = vadd.f32 %v867_v24, %v456_v13  ;;  %v521_v16 = vadd.f32 %v867_v24, %v520_v14 }
 0x108   : > { %v714_v17 = vpop.f32.mrf.mxu0  ;;  %v730_v18 = vpop.f32.mrf.mxu1 }
 0x109   : > { %547 = vst [vmem:[%s872_s14 + $0x60] sm:$0xff] %v457_v15  ;;  %563 = vst [vmem:[%s872_s14 + $0xe0] sm:$0xff] %v521_v16  ;;  %v468_v19 = vadd.f32 %v714_v17, %v867_v24  ;;  %v532_v20 = vadd.f32 %v730_v18, %v867_v24 }
 0x10a   : > { %v459_v21 = vpop.f32.mrf.mxu0  ;;  %v523_v22 = vpop.f32.mrf.mxu1 }
 0x10b   : > { %550 = vst [vmem:[%s872_s14 + $0x78] sm:$0xff] %v468_v19  ;;  %566 = vst [vmem:[%s872_s14 + $0xf8] sm:$0xff] %v532_v20  ;;  %v460_v23 = vadd.f32 %v867_v24, %v459_v21  ;;  %v524_v25 = vadd.f32 %v867_v24, %v523_v22 }
 0x10d   : > { %548 = vst [vmem:[%s872_s14 + $0x68] sm:$0xff] %v460_v23  ;;  %564 = vst [vmem:[%s872_s14 + $0xe8] sm:$0xff] %v524_v25 }
 0x10e PF: > { %s13_s12 = sadd.s32 1, %s785_s12  }
 0x10f   : > { %p10_p4 = scmp.ge.s32.totalorder %s13_s12, 4  }
 0x111   :  { %12 = sbr.rel (!%p10_p4) target bundleno = 1 (0x1), region = 62 }

</bundles_post_ra>
